<compile_context>
chip_gen: v6e
topology: v6e:2x2x1
jax: 0.10.0
libtpu: 0.0.40
codegen_flags: <defaults>
</compile_context>

<pallas_src>
import math
from functools import partial
from typing import List

import jax
import jax.numpy as jnp
from jax import lax
from jax.experimental import pallas as pl
from jax.experimental.pallas import tpu as pltpu


def num_split(num: int, divider: int) -> List[int]:
    nums = [num // divider] * divider
    for index in range(num % divider):
        nums[index] += 1
    return nums


def build_strip_meta(H: int, dim_out: int, num_branches: int):
    """Static (h_start, h_len, d_offset, d_len) for every strip, in module output order."""
    strips = []
    d0 = 0
    for num_strips, dim_branch in zip(range(1, num_branches + 1),
                                      num_split(dim_out, num_branches)):
        h_splits = num_split(H, num_strips)
        d_splits = num_split(dim_branch, num_strips)
        h0 = 0
        for hs, dl in zip(h_splits, d_splits):
            strips.append((h0, hs, d0, dl))
            h0 += hs
            d0 += dl
    return tuple(strips)


# ----------------------------- Pallas kernel -----------------------------
def mge_kernel(x_ref, w_ref, shift_ref, o_ref, acc_ref, *, strips, dim_out):
    # x_ref:     (TB, TC, H, W)    TB batch rows, one channel chunk, NCHW layout
    # w_ref:     (TC, dim_out)     Linear weights (BN scale folded), this channel chunk's rows
    # shift_ref: (1, dim_out)      fused BN shift
    # o_ref:     (1, TB, dim_out)  lane-dense output slab for this batch block
    # acc_ref:   (TB, dim_out)     f32 accumulator over channel chunks
    c_idx = pl.program_id(1)

    @pl.when(c_idx == 0)
    def _init():
        acc_ref[...] = jnp.zeros_like(acc_ref)

    x = x_ref[...].astype(jnp.float32)           # (TB, TC, H, W)
    rowmax = jnp.max(x, axis=-1)                 # (TB, TC, H): feature map touched ONCE / block
    H = rowmax.shape[-1]
    h_iota = lax.broadcasted_iota(jnp.int32, (1, 1, H), 2)
    d_iota = lax.broadcasted_iota(jnp.int32, (1, dim_out), 1)
    w = w_ref[...].astype(jnp.float32)           # (TC, dim_out)

    acc = acc_ref[...]
    # Static unroll over all strips of all branches (metadata is compile-time).
    for (h0, hs, d0, dl) in strips:
        hmask = (h_iota >= h0) & (h_iota < h0 + hs)                       # (1, 1, H)
        pooled = jnp.max(jnp.where(hmask, rowmax, -jnp.inf), axis=-1)     # (TB, TC)
        y = jnp.dot(pooled, w, preferred_element_type=jnp.float32)        # (TB, dim_out)
        cmask = (d_iota >= d0) & (d_iota < d0 + dl)                       # (1, dim_out)
        acc = acc + jnp.where(cmask, y, 0.0)
    acc_ref[...] = acc

    @pl.when(c_idx == pl.num_programs(1) - 1)
    def _finalize():
        o_ref[0] = (acc_ref[...] + shift_ref[...]).astype(o_ref.dtype)


def _choose_batch_block(N: int, cap: int = 8) -> int:
    """Largest divisor of N that is <= cap (amortizes per-step overhead, fattens the matmul)."""
    for tb in range(min(N, cap), 0, -1):
        if N % tb == 0:
            return tb
    return 1


def _choose_c_chunk(C, H, W, TB, itemsize, budget_bytes=4 << 20):
    """Largest channel chunk whose (TB, TC, H, W) block fits a small VMEM budget."""
    tc = C
    while tc % 2 == 0 and TB * tc * H * W * itemsize > budget_bytes and (tc // 2) % 8 == 0:
        tc //= 2
    return tc


def multi_granularity_embedding(feat_map_nchw, w_all, shift_all, num_branches):
    # feat_map_nchw: (N, C, H, W) — PyTorch layout, consumed directly (no transpose copies).
    N, C, H, W = feat_map_nchw.shape
    dim_out = w_all.shape[1]
    strips = build_strip_meta(H, dim_out, num_branches)
    itemsize = jnp.dtype(feat_map_nchw.dtype).itemsize
    TB = _choose_batch_block(N)
    tc = _choose_c_chunk(C, H, W, TB, itemsize)
    num_c = C // tc
    nb = N // TB

    kernel = partial(mge_kernel, strips=strips, dim_out=dim_out)
    grid_spec = pltpu.PrefetchScalarGridSpec(
        num_scalar_prefetch=0,
        grid=(nb, num_c),                                   # reduction (C chunks) last
        in_specs=[
            pl.BlockSpec((TB, tc, H, W), lambda n, c: (n, c, 0, 0)),
            pl.BlockSpec((tc, dim_out), lambda n, c: (c, 0)),
            pl.BlockSpec((1, dim_out), lambda n, c: (0, 0)),
        ],
        out_specs=pl.BlockSpec((1, TB, dim_out), lambda n, c: (n, 0, 0)),
        scratch_shapes=[pltpu.VMEM((TB, dim_out), jnp.float32)],
    )
    out3 = pl.pallas_call(
        kernel,
        grid_spec=grid_spec,
        out_shape=jax.ShapeDtypeStruct((nb, TB, dim_out), jnp.float32),
        compiler_params=pltpu.CompilerParams(
            dimension_semantics=("parallel", "arbitrary"),
            vmem_limit_bytes=32 * 1024 * 1024,
        ),
        cost_estimate=pl.CostEstimate(
            flops=2 * N * C * dim_out * len(strips) + N * C * H * W,
            bytes_accessed=int(feat_map_nchw.size) * itemsize
                           + int(w_all.size) * 4 * num_c + N * dim_out * 4,
            transcendentals=0,
        ),
    )(feat_map_nchw, w_all, shift_all)
    return out3.reshape(N, dim_out)


# ----------------------------- parameters -----------------------------
def _xavier_uniform(key, fan_in, fan_out):
    bound = math.sqrt(6.0 / (fan_in + fan_out))
    # torch Linear weight is (out, in); store transposed as (in, out) for y = x @ W
    return jax.random.uniform(key, (fan_in, fan_out), jnp.float32, -bound, bound)


def init_params(key, in_channels, dim_out, num_branches):
    """List over branches; each branch is a list over strips of (w, scale, shift)."""
    eps = 1e-5
    params = []
    for num_strips, dim_branch in zip(range(1, num_branches + 1),
                                      num_split(dim_out, num_branches)):
        strip_params = []
        for d_part in num_split(dim_branch, num_strips):
            key, sub = jax.random.split(key)
            w = _xavier_uniform(sub, in_channels, d_part)
            # BatchNorm1d at init: gamma=1, beta=0, running_mean=0, running_var=1
            scale = jnp.full((1, d_part), 1.0 / math.sqrt(1.0 + eps), jnp.float32)
            shift = jnp.zeros((1, d_part), jnp.float32)
            strip_params.append((w, scale, shift))
        params.append(strip_params)
    return params


def fold_params(params):
    """Fold BN scale into the weight; concat all strips' weights/shifts column-wise."""
    ws, shifts = [], []
    for strip_params in params:
        for (w, scale, shift) in strip_params:
            ws.append(w * scale)             # (C, d_part) * (1, d_part)
            shifts.append(shift)
    return jnp.concatenate(ws, axis=1), jnp.concatenate(shifts, axis=1)


# ----------------------------- pure-JAX reference -----------------------------
def reference(feat_map_nchw, params):
    N, C, H, W = feat_map_nchw.shape
    outs = []
    for num_strips, strip_params in zip(range(1, len(params) + 1), params):
        h_splits = num_split(H, num_strips)
        h0 = 0
        for (w, scale, shift), hs in zip(strip_params, h_splits):
            strip = feat_map_nchw[:, :, h0:h0 + hs, :]
            h0 += hs
            pooled = jnp.max(strip, axis=(2, 3))          # GMP + Flatten -> (N, C)
            outs.append(pooled @ w * scale + shift)       # Linear + eval-BN affine
    return jnp.concatenate(outs, axis=1)


if __name__ == "__main__":
    key = jax.random.PRNGKey(0)
    k_x, k_p = jax.random.split(key)

    # Small shapes consistent with the module forward: NCHW feature map.
    N, C, H, W = 2, 4, 16, 16
    dim_out, num_branches = 32, 3

    x = jax.random.normal(k_x, (N, C, H, W), jnp.float32)
    params = init_params(k_p, C, dim_out, num_branches)
    w_all, shift_all = fold_params(params)

    out = multi_granularity_embedding(x, w_all, shift_all, num_branches)
    out = jax.block_until_ready(out)

    ref = reference(x, params)
    assert out.shape == (N, dim_out), out.shape
    assert jnp.allclose(out, ref, atol=1e-4, rtol=1e-4), float(jnp.max(jnp.abs(out - ref)))
    print("KERNEL_OK")
</pallas_src>

<mosaic_0001>
module attributes {stable_mosaic.version = 11 : i64} {
  func.func @mge_kernel(%arg0: i32, %arg1: i32, %arg2: memref<2x4x16x16xf32, #tpu.memory_space<vmem>>, %arg3: memref<4x32xf32, #tpu.memory_space<vmem>>, %arg4: memref<1x32xf32, #tpu.memory_space<vmem>>, %arg5: memref<1x2x32xf32, #tpu.memory_space<vmem>>, %arg6: memref<2x32xf32, #tpu.memory_space<vmem>>) attributes {dimension_semantics = [#tpu.dimension_semantics<parallel>, #tpu.dimension_semantics<arbitrary>], iteration_bounds = array<i64: 1, 1>, scalar_prefetch = 0 : i64, scratch_operands = 1 : i64, tpu.core_type = #tpu.core_type<tc>, window_params = [{transform_indices = @transform_0, window_bounds = array<i64: 2, 4, 16, 16>}, {transform_indices = @transform_1, window_bounds = array<i64: 4, 32>}, {pipeline_mode = #tpu.pipeline_mode<synchronous>, transform_indices = @transform_2, window_bounds = array<i64: 1, 32>}, {transform_indices = @transform_3, window_bounds = array<i64: 1, 2, 32>}]} {
    %c0_i32 = arith.constant 0 : i32
    %0 = arith.cmpi eq, %arg1, %c0_i32 : i32
    %1 = arith.extui %0 : i1 to i32
    %c0_i32_0 = arith.constant 0 : i32
    %2 = arith.cmpi ne, %1, %c0_i32_0 : i32
    scf.if %2 {
      %cst_51 = arith.constant 0.000000e+00 : f32
      %139 = vector.broadcast %cst_51 : f32 to vector<2x32xf32>
      %c0_52 = arith.constant 0 : index
      %c0_53 = arith.constant 0 : index
      %140 = vector.load %arg6[%c0_52, %c0_53] : memref<2x32xf32, #tpu.memory_space<vmem>>, vector<2x32xf32>
      tpu.vector_store %arg6[%c0_52, %c0_53], %139 {strides = array<i32>} : memref<2x32xf32, #tpu.memory_space<vmem>>, vector<2x32xf32>,
    } else {
    }
    %c0 = arith.constant 0 : index
    %c0_1 = arith.constant 0 : index
    %c0_2 = arith.constant 0 : index
    %c0_3 = arith.constant 0 : index
    %3 = vector.load %arg2[%c0, %c0_1, %c0_2, %c0_3] : memref<2x4x16x16xf32, #tpu.memory_space<vmem>>, vector<2x4x16x16xf32>
    %cst = arith.constant dense<0xFF800000> : vector<2x4x16xf32>
    %4 = vector.multi_reduction <maximumf>, %3, %cst [3] : vector<2x4x16x16xf32> to vector<2x4x16xf32>
    %5 = tpu.iota {dimensions = array<i32: 2>} : vector<1x1x16xi32>
    %6 = tpu.iota {dimensions = array<i32: 1>} : vector<1x32xi32>
    %c0_4 = arith.constant 0 : index
    %c0_5 = arith.constant 0 : index
    %7 = vector.load %arg3[%c0_4, %c0_5] : memref<4x32xf32, #tpu.memory_space<vmem>>, vector<4x32xf32>
    %c0_6 = arith.constant 0 : index
    %c0_7 = arith.constant 0 : index
    %8 = vector.load %arg6[%c0_6, %c0_7] : memref<2x32xf32, #tpu.memory_space<vmem>>, vector<2x32xf32>
    %c0_i32_8 = arith.constant 0 : i32
    %9 = vector.broadcast %c0_i32_8 : i32 to vector<1x1x16xi32>
    %10 = arith.cmpi sge, %5, %9 : vector<1x1x16xi32>
    %c16_i32 = arith.constant 16 : i32
    %11 = vector.broadcast %c16_i32 : i32 to vector<1x1x16xi32>
    %12 = arith.cmpi slt, %5, %11 : vector<1x1x16xi32>
    %13 = arith.andi %10, %12 : vector<1x1x16xi1>
    %cst_9 = arith.constant 0xFF800000 : f32
    %14 = vector.shape_cast %13 : vector<1x1x16xi1> to vector<1x1x16xi1>
    %15 = vector.broadcast %14 : vector<1x1x16xi1> to vector<2x4x16xi1>
    %16 = vector.broadcast %cst_9 : f32 to vector<2x4x16xf32>
    %17 = arith.select %15, %4, %16 : vector<2x4x16xi1>, vector<2x4x16xf32>
    %cst_10 = arith.constant dense<0xFF800000> : vector<2x4xf32>
    %18 = vector.multi_reduction <maximumf>, %17, %cst_10 [2] : vector<2x4x16xf32> to vector<2x4xf32>
    %cst_11 = arith.constant dense<0.000000e+00> : vector<2x32xf32>
    %19 = tpu.matmul %18, %7, %cst_11 {dimension_numbers = #tpu.dot_dimension_numbers<[1], [0], [0], [1], [0, 0, 1, 1], [], []>} : vector<2x4xf32>, vector<4x32xf32>, vector<2x32xf32> -> vector<2x32xf32>
    %c0_i32_12 = arith.constant 0 : i32
    %20 = vector.broadcast %c0_i32_12 : i32 to vector<1x32xi32>
    %21 = arith.cmpi sge, %6, %20 : vector<1x32xi32>
    %c11_i32 = arith.constant 11 : i32
    %22 = vector.broadcast %c11_i32 : i32 to vector<1x32xi32>
    %23 = arith.cmpi slt, %6, %22 : vector<1x32xi32>
    %24 = arith.andi %21, %23 : vector<1x32xi1>
    %cst_13 = arith.constant 0.000000e+00 : f32
    %25 = vector.shape_cast %24 : vector<1x32xi1> to vector<1x32xi1>
    %26 = vector.broadcast %25 : vector<1x32xi1> to vector<2x32xi1>
    %27 = vector.broadcast %cst_13 : f32 to vector<2x32xf32>
    %28 = arith.select %26, %19, %27 : vector<2x32xi1>, vector<2x32xf32>
    %29 = arith.addf %8, %28 : vector<2x32xf32>
    %c0_i32_14 = arith.constant 0 : i32
    %30 = vector.broadcast %c0_i32_14 : i32 to vector<1x1x16xi32>
    %31 = arith.cmpi sge, %5, %30 : vector<1x1x16xi32>
    %c8_i32 = arith.constant 8 : i32
    %32 = vector.broadcast %c8_i32 : i32 to vector<1x1x16xi32>
    %33 = arith.cmpi slt, %5, %32 : vector<1x1x16xi32>
    %34 = arith.andi %31, %33 : vector<1x1x16xi1>
    %cst_15 = arith.constant 0xFF800000 : f32
    %35 = vector.shape_cast %34 : vector<1x1x16xi1> to vector<1x1x16xi1>
    %36 = vector.broadcast %35 : vector<1x1x16xi1> to vector<2x4x16xi1>
    %37 = vector.broadcast %cst_15 : f32 to vector<2x4x16xf32>
    %38 = arith.select %36, %4, %37 : vector<2x4x16xi1>, vector<2x4x16xf32>
    %cst_16 = arith.constant dense<0xFF800000> : vector<2x4xf32>
    %39 = vector.multi_reduction <maximumf>, %38, %cst_16 [2] : vector<2x4x16xf32> to vector<2x4xf32>
    %cst_17 = arith.constant dense<0.000000e+00> : vector<2x32xf32>
    %40 = tpu.matmul %39, %7, %cst_17 {dimension_numbers = #tpu.dot_dimension_numbers<[1], [0], [0], [1], [0, 0, 1, 1], [], []>} : vector<2x4xf32>, vector<4x32xf32>, vector<2x32xf32> -> vector<2x32xf32>
    %c11_i32_18 = arith.constant 11 : i32
    %41 = vector.broadcast %c11_i32_18 : i32 to vector<1x32xi32>
    %42 = arith.cmpi sge, %6, %41 : vector<1x32xi32>
    %c17_i32 = arith.constant 17 : i32
    %43 = vector.broadcast %c17_i32 : i32 to vector<1x32xi32>
    %44 = arith.cmpi slt, %6, %43 : vector<1x32xi32>
    %45 = arith.andi %42, %44 : vector<1x32xi1>
    %cst_19 = arith.constant 0.000000e+00 : f32
    %46 = vector.shape_cast %45 : vector<1x32xi1> to vector<1x32xi1>
    %47 = vector.broadcast %46 : vector<1x32xi1> to vector<2x32xi1>
    %48 = vector.broadcast %cst_19 : f32 to vector<2x32xf32>
    %49 = arith.select %47, %40, %48 : vector<2x32xi1>, vector<2x32xf32>
    %50 = arith.addf %29, %49 : vector<2x32xf32>
    %c8_i32_20 = arith.constant 8 : i32
    %51 = vector.broadcast %c8_i32_20 : i32 to vector<1x1x16xi32>
    %52 = arith.cmpi sge, %5, %51 : vector<1x1x16xi32>
    %c16_i32_21 = arith.constant 16 : i32
    %53 = vector.broadcast %c16_i32_21 : i32 to vector<1x1x16xi32>
    %54 = arith.cmpi slt, %5, %53 : vector<1x1x16xi32>
    %55 = arith.andi %52, %54 : vector<1x1x16xi1>
    %cst_22 = arith.constant 0xFF800000 : f32
    %56 = vector.shape_cast %55 : vector<1x1x16xi1> to vector<1x1x16xi1>
    %57 = vector.broadcast %56 : vector<1x1x16xi1> to vector<2x4x16xi1>
    %58 = vector.broadcast %cst_22 : f32 to vector<2x4x16xf32>
    %59 = arith.select %57, %4, %58 : vector<2x4x16xi1>, vector<2x4x16xf32>
    %cst_23 = arith.constant dense<0xFF800000> : vector<2x4xf32>
    %60 = vector.multi_reduction <maximumf>, %59, %cst_23 [2] : vector<2x4x16xf32> to vector<2x4xf32>
    %cst_24 = arith.constant dense<0.000000e+00> : vector<2x32xf32>
    %61 = tpu.matmul %60, %7, %cst_24 {dimension_numbers = #tpu.dot_dimension_numbers<[1], [0], [0], [1], [0, 0, 1, 1], [], []>} : vector<2x4xf32>, vector<4x32xf32>, vector<2x32xf32> -> vector<2x32xf32>
    %c17_i32_25 = arith.constant 17 : i32
    %62 = vector.broadcast %c17_i32_25 : i32 to vector<1x32xi32>
    %63 = arith.cmpi sge, %6, %62 : vector<1x32xi32>
    %c22_i32 = arith.constant 22 : i32
    %64 = vector.broadcast %c22_i32 : i32 to vector<1x32xi32>
    %65 = arith.cmpi slt, %6, %64 : vector<1x32xi32>
    %66 = arith.andi %63, %65 : vector<1x32xi1>
    %cst_26 = arith.constant 0.000000e+00 : f32
    %67 = vector.shape_cast %66 : vector<1x32xi1> to vector<1x32xi1>
    %68 = vector.broadcast %67 : vector<1x32xi1> to vector<2x32xi1>
    %69 = vector.broadcast %cst_26 : f32 to vector<2x32xf32>
    %70 = arith.select %68, %61, %69 : vector<2x32xi1>, vector<2x32xf32>
    %71 = arith.addf %50, %70 : vector<2x32xf32>
    %c0_i32_27 = arith.constant 0 : i32
    %72 = vector.broadcast %c0_i32_27 : i32 to vector<1x1x16xi32>
    %73 = arith.cmpi sge, %5, %72 : vector<1x1x16xi32>
    %c6_i32 = arith.constant 6 : i32
    %74 = vector.broadcast %c6_i32 : i32 to vector<1x1x16xi32>
    %75 = arith.cmpi slt, %5, %74 : vector<1x1x16xi32>
    %76 = arith.andi %73, %75 : vector<1x1x16xi1>
    %cst_28 = arith.constant 0xFF800000 : f32
    %77 = vector.shape_cast %76 : vector<1x1x16xi1> to vector<1x1x16xi1>
    %78 = vector.broadcast %77 : vector<1x1x16xi1> to vector<2x4x16xi1>
    %79 = vector.broadcast %cst_28 : f32 to vector<2x4x16xf32>
    %80 = arith.select %78, %4, %79 : vector<2x4x16xi1>, vector<2x4x16xf32>
    %cst_29 = arith.constant dense<0xFF800000> : vector<2x4xf32>
    %81 = vector.multi_reduction <maximumf>, %80, %cst_29 [2] : vector<2x4x16xf32> to vector<2x4xf32>
    %cst_30 = arith.constant dense<0.000000e+00> : vector<2x32xf32>
    %82 = tpu.matmul %81, %7, %cst_30 {dimension_numbers = #tpu.dot_dimension_numbers<[1], [0], [0], [1], [0, 0, 1, 1], [], []>} : vector<2x4xf32>, vector<4x32xf32>, vector<2x32xf32> -> vector<2x32xf32>
    %c22_i32_31 = arith.constant 22 : i32
    %83 = vector.broadcast %c22_i32_31 : i32 to vector<1x32xi32>
    %84 = arith.cmpi sge, %6, %83 : vector<1x32xi32>
    %c26_i32 = arith.constant 26 : i32
    %85 = vector.broadcast %c26_i32 : i32 to vector<1x32xi32>
    %86 = arith.cmpi slt, %6, %85 : vector<1x32xi32>
    %87 = arith.andi %84, %86 : vector<1x32xi1>
    %cst_32 = arith.constant 0.000000e+00 : f32
    %88 = vector.shape_cast %87 : vector<1x32xi1> to vector<1x32xi1>
    %89 = vector.broadcast %88 : vector<1x32xi1> to vector<2x32xi1>
    %90 = vector.broadcast %cst_32 : f32 to vector<2x32xf32>
    %91 = arith.select %89, %82, %90 : vector<2x32xi1>, vector<2x32xf32>
    %92 = arith.addf %71, %91 : vector<2x32xf32>
    %c6_i32_33 = arith.constant 6 : i32
    %93 = vector.broadcast %c6_i32_33 : i32 to vector<1x1x16xi32>
    %94 = arith.cmpi sge, %5, %93 : vector<1x1x16xi32>
    %c11_i32_34 = arith.constant 11 : i32
    %95 = vector.broadcast %c11_i32_34 : i32 to vector<1x1x16xi32>
    %96 = arith.cmpi slt, %5, %95 : vector<1x1x16xi32>
    %97 = arith.andi %94, %96 : vector<1x1x16xi1>
    %cst_35 = arith.constant 0xFF800000 : f32
    %98 = vector.shape_cast %97 : vector<1x1x16xi1> to vector<1x1x16xi1>
    %99 = vector.broadcast %98 : vector<1x1x16xi1> to vector<2x4x16xi1>
    %100 = vector.broadcast %cst_35 : f32 to vector<2x4x16xf32>
    %101 = arith.select %99, %4, %100 : vector<2x4x16xi1>, vector<2x4x16xf32>
    %cst_36 = arith.constant dense<0xFF800000> : vector<2x4xf32>
    %102 = vector.multi_reduction <maximumf>, %101, %cst_36 [2] : vector<2x4x16xf32> to vector<2x4xf32>
    %cst_37 = arith.constant dense<0.000000e+00> : vector<2x32xf32>
    %103 = tpu.matmul %102, %7, %cst_37 {dimension_numbers = #tpu.dot_dimension_numbers<[1], [0], [0], [1], [0, 0, 1, 1], [], []>} : vector<2x4xf32>, vector<4x32xf32>, vector<2x32xf32> -> vector<2x32xf32>
    %c26_i32_38 = arith.constant 26 : i32
    %104 = vector.broadcast %c26_i32_38 : i32 to vector<1x32xi32>
    %105 = arith.cmpi sge, %6, %104 : vector<1x32xi32>
    %c29_i32 = arith.constant 29 : i32
    %106 = vector.broadcast %c29_i32 : i32 to vector<1x32xi32>
    %107 = arith.cmpi slt, %6, %106 : vector<1x32xi32>
    %108 = arith.andi %105, %107 : vector<1x32xi1>
    %cst_39 = arith.constant 0.000000e+00 : f32
    %109 = vector.shape_cast %108 : vector<1x32xi1> to vector<1x32xi1>
    %110 = vector.broadcast %109 : vector<1x32xi1> to vector<2x32xi1>
    %111 = vector.broadcast %cst_39 : f32 to vector<2x32xf32>
    %112 = arith.select %110, %103, %111 : vector<2x32xi1>, vector<2x32xf32>
    %113 = arith.addf %92, %112 : vector<2x32xf32>
    %c11_i32_40 = arith.constant 11 : i32
    %114 = vector.broadcast %c11_i32_40 : i32 to vector<1x1x16xi32>
    %115 = arith.cmpi sge, %5, %114 : vector<1x1x16xi32>
    %c16_i32_41 = arith.constant 16 : i32
    %116 = vector.broadcast %c16_i32_41 : i32 to vector<1x1x16xi32>
    %117 = arith.cmpi slt, %5, %116 : vector<1x1x16xi32>
    %118 = arith.andi %115, %117 : vector<1x1x16xi1>
    %cst_42 = arith.constant 0xFF800000 : f32
    %119 = vector.shape_cast %118 : vector<1x1x16xi1> to vector<1x1x16xi1>
    %120 = vector.broadcast %119 : vector<1x1x16xi1> to vector<2x4x16xi1>
    %121 = vector.broadcast %cst_42 : f32 to vector<2x4x16xf32>
    %122 = arith.select %120, %4, %121 : vector<2x4x16xi1>, vector<2x4x16xf32>
    %cst_43 = arith.constant dense<0xFF800000> : vector<2x4xf32>
    %123 = vector.multi_reduction <maximumf>, %122, %cst_43 [2] : vector<2x4x16xf32> to vector<2x4xf32>
    %cst_44 = arith.constant dense<0.000000e+00> : vector<2x32xf32>
    %124 = tpu.matmul %123, %7, %cst_44 {dimension_numbers = #tpu.dot_dimension_numbers<[1], [0], [0], [1], [0, 0, 1, 1], [], []>} : vector<2x4xf32>, vector<4x32xf32>, vector<2x32xf32> -> vector<2x32xf32>
    %c29_i32_45 = arith.constant 29 : i32
    %125 = vector.broadcast %c29_i32_45 : i32 to vector<1x32xi32>
    %126 = arith.cmpi sge, %6, %125 : vector<1x32xi32>
    %c32_i32 = arith.constant 32 : i32
    %127 = vector.broadcast %c32_i32 : i32 to vector<1x32xi32>
    %128 = arith.cmpi slt, %6, %127 : vector<1x32xi32>
    %129 = arith.andi %126, %128 : vector<1x32xi1>
    %cst_46 = arith.constant 0.000000e+00 : f32
    %130 = vector.shape_cast %129 : vector<1x32xi1> to vector<1x32xi1>
    %131 = vector.broadcast %130 : vector<1x32xi1> to vector<2x32xi1>
    %132 = vector.broadcast %cst_46 : f32 to vector<2x32xf32>
    %133 = arith.select %131, %124, %132 : vector<2x32xi1>, vector<2x32xf32>
    %134 = arith.addf %113, %133 : vector<2x32xf32>
    %c0_47 = arith.constant 0 : index
    %c0_48 = arith.constant 0 : index
    %135 = vector.load %arg6[%c0_47, %c0_48] : memref<2x32xf32, #tpu.memory_space<vmem>>, vector<2x32xf32>
    tpu.vector_store %arg6[%c0_47, %c0_48], %134 {strides = array<i32>} : memref<2x32xf32, #tpu.memory_space<vmem>>, vector<2x32xf32>,
    %c0_i32_49 = arith.constant 0 : i32
    %136 = arith.cmpi eq, %arg1, %c0_i32_49 : i32
    %137 = arith.extui %136 : i1 to i32
    %c0_i32_50 = arith.constant 0 : i32
    %138 = arith.cmpi ne, %137, %c0_i32_50 : i32
    scf.if %138 {
      %c0_51 = arith.constant 0 : index
      %c0_52 = arith.constant 0 : index
      %139 = vector.load %arg6[%c0_51, %c0_52] : memref<2x32xf32, #tpu.memory_space<vmem>>, vector<2x32xf32>
      %c0_53 = arith.constant 0 : index
      %c0_54 = arith.constant 0 : index
      %140 = vector.load %arg4[%c0_53, %c0_54] : memref<1x32xf32, #tpu.memory_space<vmem>>, vector<1x32xf32>
      %141 = vector.broadcast %140 : vector<1x32xf32> to vector<2x32xf32>
      %142 = arith.addf %139, %141 : vector<2x32xf32>
      %c0_55 = arith.constant 0 : index
      %c0_56 = arith.constant 0 : index
      %c0_57 = arith.constant 0 : index
      %143 = vector.load %arg5[%c0_55, %c0_56, %c0_57] : memref<1x2x32xf32, #tpu.memory_space<vmem>>, vector<1x2x32xf32>
      %144 = vector.shape_cast %143 : vector<1x2x32xf32> to vector<2x32xf32>
      %145 = vector.shape_cast %142 : vector<2x32xf32> to vector<1x2x32xf32>
      tpu.vector_store %arg5[%c0_55, %c0_56, %c0_57], %145 {strides = array<i32>} : memref<1x2x32xf32, #tpu.memory_space<vmem>>, vector<1x2x32xf32>,
    } else {
    }
    return
  }
  func.func @transform_0(%arg0: i32, %arg1: i32) -> (i32, i32, i32, i32) {
    %c0_i32 = arith.constant 0 : i32
    %c0_i32_0 = arith.constant 0 : i32
    %c0_i32_1 = arith.constant 0 : i32
    return %arg0, %arg1, %c0_i32, %c0_i32_0 : i32, i32, i32, i32
  }
  func.func @transform_1(%arg0: i32, %arg1: i32) -> (i32, i32) {
    %c0_i32 = arith.constant 0 : i32
    %c0_i32_0 = arith.constant 0 : i32
    return %arg1, %c0_i32 : i32, i32
  }
  func.func @transform_2(%arg0: i32, %arg1: i32) -> (i32, i32) {
    %c0_i32 = arith.constant 0 : i32
    %c0_i32_0 = arith.constant 0 : i32
    %c0_i32_1 = arith.constant 0 : i32
    return %c0_i32, %c0_i32_0 : i32, i32
  }
  func.func @transform_3(%arg0: i32, %arg1: i32) -> (i32, i32, i32) {
    %c0_i32 = arith.constant 0 : i32
    %c0_i32_0 = arith.constant 0 : i32
    %c0_i32_1 = arith.constant 0 : i32
    return %arg0, %c0_i32, %c0_i32_0 : i32, i32, i32
  }
}

</mosaic_0001>

<bundles_post_ra>
// kernel: tpu_custom_call.1
= control target key start
LH: loop header
LB: loop body
LE: loop exit
PB: predicated region body
PF: predicated region fallthrough
CT: control target
= control target key end

     0   :  { %8 = vsyncpa [#allocation4], 0  ;;  %s1199_s0 = inlined_call_operand.hbm [shape: f32[2,4,16,16], index: 0, kind: input, shape index: {}]   ;;  %s1200_s1 = inlined_call_operand.hbm [shape: f32[4,32], index: 1, kind: input, shape index: {}]   ;;  %s1201_s2 = inlined_call_operand.vmem [shape: f32[1,32], index: 2, kind: input, shape index: {}]   ;;  %s1202_s3 = inlined_call_operand.hbm [shape: f32[1,2,32], index: 3, kind: output, shape index: {}]  }
   0x1   :  { %9 = vsyncpa [#allocation7], 0 }
   0x2   :  { %10 = vsyncpa [#allocation5], 0  ;;  %s993_s12 = smov [#allocation3]  }
   0x3   :  { %s16_s13 = sshll.u32 %s993_s12, 4  ;;  %s17_s13 = int_to_ptr.vmem [resolvable:$true] %s16_s13 }
   0x4   :  { %s935_s14 = scalar_lea.vmem %s17_s13, 2048  ;;  %p940_p1 = scmp.lt.s32.totalorder %s17_s13, %s17_s13 }
   0x5   :  { %p936_p0 = scmp.ne.s32.totalorder %s17_s13, %s935_s14  ;;  %p941_p2 = scmp.lt.s32.totalorder %s935_s14, %s935_s14 }
   0x7   :  { %p942_p3 = por %p941_p2, %p940_p1 }
   0x9   :  { %p943_p4 = pnand %p942_p3, %p936_p0 }
   0xb   :  { %946 = shalt.err (!%p943_p4)
}
   0xc   :  { %s994_s15 = smov 128   ;;  %s995_s16 = smov 8  }
   0xd   :  { %22 = dma.hbm_to_vmem [thread:$0]  %s1199_s0, 2048, %s17_s13, [#allocation4], %s994_s15, %s994_s15, %s995_s16  }
   0xe   :  { %s996_s19 = smov [#allocation6]  }
   0xf   :  { %s29_s20 = sshll.u32 %s996_s19, 4  ;;  %s30_s20 = int_to_ptr.vmem [resolvable:$true] %s29_s20 }
  0x10   :  { %s955_s21 = scalar_lea.vmem %s30_s20, 64  ;;  %p960_p6 = scmp.lt.s32.totalorder %s30_s20, %s30_s20 }
  0x11   :  { %p956_p5 = scmp.ne.s32.totalorder %s30_s20, %s955_s21  ;;  %p961_p7 = scmp.lt.s32.totalorder %s955_s21, %s955_s21 }
  0x13   :  { %p962_p8 = por %p961_p7, %p960_p6 }
  0x15   :  { %p963_p9 = pnand %p962_p8, %p956_p5 }
  0x17   :  { %966 = shalt.err (!%p963_p9)
}
  0x18   :  { %32 = dma.hbm_to_vmem [thread:$0]  %s1200_s1, 64, %s30_s20, [#allocation7]  }
  0x19   :  { %987 = dma.done.wait [#allocation4], 2048  }
  0x1a   :  { %988 = vsyncadd [#allocation4], 4294965248 }
  0x1b   :  { %989 = dma.done.wait [#allocation7], 64  }
  0x1c   :  { %990 = vsyncadd [#allocation7], 4294967232  ;;  %vm63_vm0 = vcmask 130048   ;;  %v49_v0 = vld [vmem:[#allocation3 + $0x10] sm:$0xff]  ;;  %v47_v1 = vld [vmem:[#allocation3] sm:$0xff]  ;;  %v112_v36 = vlaneseq  ;;  %vm146_vm1 = vcmask 130112  }
  0x1d   :  { %v50_v2 = vld [vmem:[#allocation3 + $0x18] sm:$0xff]  ;;  %v70_v3 = vsel %vm63_vm0, %v49_v0, -inf  ;;  %v64_v4 = vsel %vm63_vm0, %v47_v1, -inf  ;;  %v48_v5 = vld [vmem:[#allocation3 + $0x8] sm:$0xff]  ;;  %v55_v9 = vld [vmem:[#allocation3 + $0x40] sm:$0xff]  ;;  %vm211_vm2 = vcmask 1041409  }
  0x1e   :  { %71 = vmax.xlane.f32.xlu1 %v70_v3  ;;  %65 = vmax.xlane.f32.xlu0 %v64_v4  ;;  %v73_v6 = vsel %vm63_vm0, %v50_v2, -inf  ;;  %v67_v7 = vsel %vm63_vm0, %v48_v5, -inf  ;;  %v56_v8 = vld [vmem:[#allocation3 + $0x48] sm:$0xff]  ;;  %v88_v11 = vsel %vm63_vm0, %v55_v9, -inf  ;;  %v58_v12 = vld [vmem:[#allocation3 + $0x58] sm:$0xff]  ;;  %v57_v13 = vld [vmem:[#allocation3 + $0x50] sm:$0xff] }
  0x1f   :  { %v91_v10 = vsel %vm63_vm0, %v56_v8, -inf  ;;  %v97_v14 = vsel %vm63_vm0, %v58_v12, -inf  ;;  %v94_v15 = vsel %vm63_vm0, %v57_v13, -inf  ;;  %v52_v16 = vld [vmem:[#allocation3 + $0x28] sm:$0xff]  ;;  %v51_v17 = vld [vmem:[#allocation3 + $0x20] sm:$0xff]  ;;  %v54_v24 = vld [vmem:[#allocation3 + $0x38] sm:$0xff] }
  0x20   :  { %v79_v18 = vsel %vm63_vm0, %v52_v16, -inf  ;;  %v76_v19 = vsel %vm63_vm0, %v51_v17, -inf  ;;  %v60_v20 = vld [vmem:[#allocation3 + $0x68] sm:$0xff]  ;;  %v59_v21 = vld [vmem:[#allocation3 + $0x60] sm:$0xff]  ;;  %v53_v25 = vld [vmem:[#allocation3 + $0x30] sm:$0xff]  ;;  %v85_v26 = vsel %vm63_vm0, %v54_v24, -inf }
  0x21   :  { %v103_v22 = vsel %vm63_vm0, %v60_v20, -inf  ;;  %v100_v23 = vsel %vm63_vm0, %v59_v21, -inf  ;;  %v82_v27 = vsel %vm63_vm0, %v53_v25, -inf  ;;  %v62_v28 = vld [vmem:[#allocation3 + $0x78] sm:$0xff]  ;;  %v61_v29 = vld [vmem:[#allocation3 + $0x70] sm:$0xff]  ;;  %v1042_v39 = vand.u32 127, %v112_v36 }
  0x22   :  { %74 = vmax.xlane.f32.xlu1 %v73_v6  ;;  %68 = vmax.xlane.f32.xlu0 %v67_v7  ;;  %v109_v30 = vsel %vm63_vm0, %v62_v28, -inf  ;;  %v106_v31 = vsel %vm63_vm0, %v61_v29, -inf  ;;  %v138_v43 = vshrl.u32 %v112_v36, 7  ;;  %vm213_vm3 = vcmask 1042434   ;;  %s999_s24 = smov [#allocation8]  }
  0x23   :  { %v141_v40 = vadd.s32 4294967288, %v1042_v39  ;;  %vm215_vm4 = vcmask 1043459   ;;  %vm117_vm5 = vcmp.lt.s32.totalorder %v1042_v39, 16  ;;  %vm224_vm6 = vcmask 125952   ;;  %s855_s25 = sshll.u32 %s999_s24, 4  ;;  %s856_s25 = int_to_ptr.vmem [resolvable:$true] %s855_s25 }
  0x24   :  { %v1046_v47 = vsub.s32 %v1042_v39, %v138_v43  ;;  %vm325_vm7 = vcmp.lt.s32.totalorder %v1042_v39, 8  ;;  %vm427_vm8 = vcmp.ge.s32.totalorder %v1042_v39, 8  ;;  %vm529_vm10 = vcmp.lt.s32.totalorder %v1042_v39, 6  ;;  %s967_s26 = scalar_lea.vmem %s856_s25, 32  ;;  %p972_p11 = scmp.lt.s32.totalorder %s856_s25, %s856_s25 }
  0x25   :  { %v144_v44 = vsub.s32 %v141_v40, %v138_v43  ;;  %vm1080_vm9 = vmand %vm427_vm8, %vm117_vm5  ;;  %vm319_vm11 = vcmp.lt.s32.totalorder %v1042_v39, 11  ;;  %vm631_vm12 = vcmp.ge.s32.totalorder %v1042_v39, 6  ;;  %vm420_vm14 = vcmp.ge.s32.totalorder %v1042_v39, 11  ;;  %v1122_v40 = vld [vmem:[#allocation6] sm:$0xf]  ;;  %p968_p10 = scmp.ne.s32.totalorder %s856_s25, %s967_s26  ;;  %p973_p12 = scmp.lt.s32.totalorder %s967_s26, %s967_s26 }
  0x26   :  { %92 = vmax.xlane.f32.xlu1 %v91_v10  ;;  %89 = vmax.xlane.f32.xlu0 %v88_v11  ;;  %vm1103_vm13 = vmand %vm631_vm12, %vm319_vm11  ;;  %vm245_vm0 = vcmask 1043456   ;;  %v997_v43 = vmov 0.0   ;;  %vm726_vm12 = vcmp.ge.s32.totalorder %v1042_v39, 26 }
  0x27   :  { %vm1118_vm15 = vmand %vm420_vm14, %vm117_vm5  ;;  %890 = vmatprep.subr.mxu0 %v997_v43  ;;  %895 = vmatprep.subr.mxu1 %v997_v43  ;;  %p974_p13 = por %p973_p12, %p972_p11 }
  0x28   :  { %891 = vmatpush3.msk.msra.mxu0 %vm245_vm0, %v1122_v40  ;;  %896 = vmatpush3.msk.msra.mxu1 %vm245_vm0, %v1122_v40 }
  0x29   :  { %900 = vmatprep.subr.mxu0 %v997_v43  ;;  %905 = vmatprep.subr.mxu1 %v997_v43  ;;  %p975_p0 = pnand %p974_p13, %p968_p10 }
  0x2a   :  { %98 = vmax.xlane.f32.xlu1 %v97_v14  ;;  %95 = vmax.xlane.f32.xlu0 %v94_v15 }
  0x2e   :  { %80 = vmax.xlane.f32.xlu1 %v79_v18  ;;  %77 = vmax.xlane.f32.xlu0 %v76_v19 }
  0x32   :  { %104 = vmax.xlane.f32.xlu1 %v103_v22  ;;  %101 = vmax.xlane.f32.xlu0 %v100_v23 }
  0x36   :  { %86 = vmax.xlane.f32.xlu1 %v85_v26  ;;  %83 = vmax.xlane.f32.xlu0 %v82_v27 }
  0x3a   :  { %110 = vmax.xlane.f32.xlu1 %v109_v30  ;;  %107 = vmax.xlane.f32.xlu0 %v106_v31 }
  0xa7   :  { %v72_v32 = vpop.xlane.xlu1 %71  ;;  %v66_v33 = vpop.xlane.xlu0 %65 }
  0xa8   :  { %v151_v54 = vrot.slane %v72_v32, %v1046_v47  ;;  %v140_v55 = vrot.slane %v66_v33, %v1046_v47 }
  0xab   :  { %v75_v34 = vpop.xlane.xlu1 %74  ;;  %v69_v35 = vpop.xlane.xlu0 %68 }
  0xac   :  { %v155_v48 = vrot.slane %v75_v34, %v144_v44  ;;  %v145_v49 = vrot.slane %v69_v35, %v144_v44 }
  0xae   :  { %v156_v56 = vsel %vm146_vm1, %v155_v48, %v151_v54  ;;  %v147_v57 = vsel %vm146_vm1, %v145_v49, %v140_v55 }
  0xaf   :  { %v93_v37 = vpop.xlane.xlu1 %92  ;;  %v90_v38 = vpop.xlane.xlu0 %89  ;;  %v212_v5 = vsel %vm211_vm2, %v156_v56, %v147_v57 }
  0xb0   :  { %v182_v1 = vrot.slane %v93_v37, %v144_v44  ;;  %v178_v2 = vrot.slane %v90_v38, %v1046_v47 }
  0xb2   :  { %v183_v13 = vsel %vm146_vm1, %v182_v1, %v178_v2 }
  0xb3   :  { %v99_v41 = vpop.xlane.xlu1 %98  ;;  %v96_v42 = vpop.xlane.xlu0 %95 }
  0xb4   :  { %v191_v58 = vrot.slane %v99_v41, %v144_v44  ;;  %v187_v59 = vrot.slane %v96_v42, %v1046_v47 }
  0xb6   :  { %v192_v6 = vsel %vm146_vm1, %v191_v58, %v187_v59 }
  0xb7   :  { %v81_v45 = vpop.xlane.xlu1 %80  ;;  %v78_v46 = vpop.xlane.xlu0 %77  ;;  %v217_v17 = vsel %vm211_vm2, %v192_v6, %v183_v13 }
  0xb8   :  { %v164_v50 = vrot.slane %v81_v45, %v144_v44  ;;  %v160_v51 = vrot.slane %v78_v46, %v1046_v47 }
  0xba   :  { %v165_v60 = vsel %vm146_vm1, %v164_v50, %v160_v51 }
  0xbb   :  { %v105_v52 = vpop.xlane.xlu1 %104  ;;  %v102_v53 = vpop.xlane.xlu0 %101  ;;  %v214_v7 = vsel %vm213_vm3, %v165_v60, %v212_v5 }
  0xbc   :  { %v200_v61 = vrot.slane %v105_v52, %v144_v44  ;;  %v196_v62 = vrot.slane %v102_v53, %v1046_v47 }
  0xbe   :  { %v201_v9 = vsel %vm146_vm1, %v200_v61, %v196_v62 }
  0xbf   :  { %v87_v63 = vpop.xlane.xlu1 %86  ;;  %v84_v0 = vpop.xlane.xlu0 %83  ;;  %v218_v19 = vsel %vm213_vm3, %v201_v9, %v217_v17  ;;  %vm45_vm3 = vcmask 254976  }
  0xc0   :  { %v173_v3 = vrot.slane %v87_v63, %v144_v44  ;;  %v169_v4 = vrot.slane %v84_v0, %v1046_v47  ;;  %46 = vst.msk [vmem:[#allocation2] sm:$0x3] %vm45_vm3, %v997_v43 }
  0xc2   :  { %v174_v8 = vsel %vm146_vm1, %v173_v3, %v169_v4 }
  0xc3   :  { %v216_v10 = vsel %vm215_vm4, %v174_v8, %v214_v7  ;;  %v111_v11 = vpop.xlane.xlu1 %110  ;;  %v108_v12 = vpop.xlane.xlu0 %107 }
  0xc4   :  { %v209_v14 = vrot.slane %v111_v11, %v144_v44  ;;  %v205_v15 = vrot.slane %v108_v12, %v1046_v47  ;;  %v222_v16 = vsel %vm117_vm5, %v216_v10, -inf  ;;  %v329_v21 = vsel %vm325_vm7, %v216_v10, -inf }
  0xc5   :  { %v225_v18 = vsel %vm224_vm6, %v222_v16, -inf  ;;  %v331_v25 = vsel %vm224_vm6, %v329_v21, -inf  ;;  %v431_v27 = vsel %vm1080_vm9, %v216_v10, -inf  ;;  %v533_v31 = vsel %vm529_vm10, %v216_v10, -inf }
  0xc6   :  { %v210_v20 = vsel %vm146_vm1, %v209_v14, %v205_v15  ;;  %226 = vmax.xlane.f32.xlu0 %v225_v18  ;;  %v433_v29 = vsel %vm224_vm6, %v431_v27, -inf  ;;  %v535_v34 = vsel %vm224_vm6, %v533_v31, -inf  ;;  %v635_v36 = vsel %vm1103_vm13, %v216_v10, -inf }
  0xc7   :  { %v219_v22 = vsel %vm215_vm4, %v210_v20, %v218_v19  ;;  %v637_v41 = vsel %vm224_vm6, %v635_v36, -inf  ;;  %vm998_vm1 = vmmov 0   ;;  %v736_v44 = vsel %vm1118_vm15, %v216_v10, -inf }
  0xc8   :  { %v223_v24 = vsel %vm117_vm5, %v219_v22, -inf  ;;  %v330_v28 = vsel %vm325_vm7, %v219_v22, -inf  ;;  %v432_v32 = vsel %vm1080_vm9, %v219_v22, -inf  ;;  %v534_v37 = vsel %vm529_vm10, %v219_v22, -inf  ;;  %892 = vmatprep.mubr.msk.f32.mxu0 %vm998_vm1, %v997_v43  ;;  %897 = vmatprep.mubr.msk.f32.mxu1 %vm998_vm1, %v997_v43 }
  0xc9   :  { %v228_v26 = vsel %vm224_vm6, %v223_v24, -inf  ;;  %v334_v30 = vsel %vm224_vm6, %v330_v28, -inf  ;;  %v436_v35 = vsel %vm224_vm6, %v432_v32, -inf  ;;  %v538_v42 = vsel %vm224_vm6, %v534_v37, -inf }
  0xca   :  { %332 = vmax.xlane.f32.xlu0 %v331_v25  ;;  %229 = vmax.xlane.f32.xlu1 %v228_v26  ;;  %v636_v45 = vsel %vm1103_vm13, %v219_v22, -inf  ;;  %v738_v46 = vsel %vm224_vm6, %v736_v44, -inf  ;;  %v737_v49 = vsel %vm1118_vm15, %v219_v22, -inf  ;;  %vm242_vm4 = vcmask 31744   ;;  %v115_v22 = vld [vmem:[#allocation2] sm:$0x3] }
  0xcb   :  { %v640_v48 = vsel %vm224_vm6, %v636_v45, -inf  ;;  %v741_v50 = vsel %vm224_vm6, %v737_v49, -inf  ;;  %vm421_vm5 = vcmp.lt.s32.totalorder %v1042_v39, 17  ;;  %vm522_vm6 = vcmp.ge.s32.totalorder %v1042_v39, 17 }
  0xcc   :  { %vm523_vm7 = vcmp.lt.s32.totalorder %v1042_v39, 22  ;;  %vm422_vm8 = vmand %vm420_vm14, %vm421_vm5  ;;  %vm625_vm9 = vcmp.lt.s32.totalorder %v1042_v39, 26  ;;  %vm727_vm13 = vcmp.lt.s32.totalorder %v1042_v39, 29 }
  0xcd   :  { %vm524_vm10 = vmand %vm522_vm6, %vm523_vm7 }
  0xce   :  { %434 = vmax.xlane.f32.xlu0 %v433_v29  ;;  %335 = vmax.xlane.f32.xlu1 %v334_v30  ;;  %vm728_vm14 = vmand %vm726_vm12, %vm727_vm13 }
  0xd2   :  { %536 = vmax.xlane.f32.xlu0 %v535_v34  ;;  %437 = vmax.xlane.f32.xlu1 %v436_v35 }
  0xd6   :  { %638 = vmax.xlane.f32.xlu0 %v637_v41  ;;  %539 = vmax.xlane.f32.xlu1 %v538_v42  ;;  %v877_v42 = vld [vmem:[%s1201_s2] ss:$0 sm:$0xff] }
  0xda   :  { %739 = vmax.xlane.f32.xlu0 %v738_v46  ;;  %641 = vmax.xlane.f32.xlu1 %v640_v48 }
  0xde   :  { %742 = vmax.xlane.f32.xlu1 %v741_v50 }
 0x14f   :  { %v227_v51 = vpop.xlane.xlu0 %226 }
 0x150   :  { %v236_v54 = vrot.slane %v227_v51, %v1046_v47 }
 0x153   :  { %v230_v52 = vpop.xlane.xlu1 %229  ;;  %v333_v53 = vpop.xlane.xlu0 %332 }
 0x154   :  { %v240_v55 = vrot.slane %v230_v52, %v1046_v47  ;;  %v342_v59 = vrot.slane %v333_v53, %v1046_v47 }
 0x156   :  { %v241_v56 = vsel %vm211_vm2, %v240_v55, %v236_v54 }
 0x157   :  { %v336_v57 = vpop.xlane.xlu1 %335  ;;  %893 = vmatmul.mubr.msk.f32.vlgmr.msra.gmra.mxu0 %vm242_vm4, %v241_v56  ;;  %v435_v58 = vpop.xlane.xlu0 %434 }
 0x158   :  { %v346_v60 = vrot.slane %v336_v57, %v1046_v47  ;;  %901 = vmatpush3.msk.msra.mxu0 %vm245_vm0, %v1122_v40  ;;  %902 = vmatprep.mubr.msk.f32.mxu0 %vm998_vm1, %v997_v43  ;;  %v444_v0 = vrot.slane %v435_v58, %v1046_v47 }
 0x159   :  { %910 = vmatprep.subr.mxu0 %v997_v43 }
 0x15a   :  { %v347_v61 = vsel %vm211_vm2, %v346_v60, %v342_v59 }
 0x15b   :  { %v438_v62 = vpop.xlane.xlu1 %437  ;;  %898 = vmatmul.mubr.msk.f32.vlgmr.msra.gmra.mxu1 %vm242_vm4, %v347_v61  ;;  %v537_v63 = vpop.xlane.xlu0 %536 }
 0x15c   :  { %v448_v1 = vrot.slane %v438_v62, %v1046_v47  ;;  %906 = vmatpush3.msk.msra.mxu1 %vm245_vm0, %v1122_v40  ;;  %907 = vmatprep.mubr.msk.f32.mxu1 %vm998_vm1, %v997_v43  ;;  %v546_v5 = vrot.slane %v537_v63, %v1046_v47 }
 0x15d   :  { %915 = vmatprep.subr.mxu1 %v997_v43 }
 0x15e   :  { %v449_v2 = vsel %vm211_vm2, %v448_v1, %v444_v0 }
 0x15f   :  { %v540_v3 = vpop.xlane.xlu1 %539  ;;  %903 = vmatmul.mubr.msk.f32.vlgmr.msra.gmra.mxu0 %vm242_vm4, %v449_v2  ;;  %v639_v4 = vpop.xlane.xlu0 %638 }
 0x160   :  { %v550_v6 = vrot.slane %v540_v3, %v1046_v47  ;;  %911 = vmatpush3.msk.msra.mxu0 %vm245_vm0, %v1122_v40  ;;  %912 = vmatprep.mubr.msk.f32.mxu0 %vm998_vm1, %v997_v43  ;;  %v648_v9 = vrot.slane %v639_v4, %v1046_v47 }
 0x162   :  { %v551_v7 = vsel %vm211_vm2, %v550_v6, %v546_v5 }
 0x163   :  { %v642_v8 = vpop.xlane.xlu1 %641  ;;  %908 = vmatmul.mubr.msk.f32.vlgmr.msra.gmra.mxu1 %vm242_vm4, %v551_v7  ;;  %v740_v11 = vpop.xlane.xlu0 %739 }
 0x164   :  { %v652_v10 = vrot.slane %v642_v8, %v1046_v47  ;;  %916 = vmatpush3.msk.msra.mxu1 %vm245_vm0, %v1122_v40  ;;  %917 = vmatprep.mubr.msk.f32.mxu1 %vm998_vm1, %v997_v43  ;;  %v749_v14 = vrot.slane %v740_v11, %v1046_v47  ;;  %vm828_vm0 = vcmp.lt.s32.totalorder %v1042_v39, 32 }
 0x166   :  { %v653_v12 = vsel %vm211_vm2, %v652_v10, %v648_v9 }
 0x167   :  { %v743_v13 = vpop.xlane.xlu1 %742  ;;  %913 = vmatmul.mubr.msk.f32.vlgmr.msra.gmra.mxu0 %vm242_vm4, %v653_v12 }
 0x168   :  { %v753_v15 = vrot.slane %v743_v13, %v1046_v47 }
 0x16a   :  { %v754_v16 = vsel %vm211_vm2, %v753_v15, %v749_v14  ;;  %vm624_vm2 = vcmp.ge.s32.totalorder %v1042_v39, 22 }
 0x16b   :  { %918 = vmatmul.mubr.msk.f32.vlgmr.msra.gmra.mxu1 %vm242_vm4, %v754_v16  ;;  %vm626_vm15 = vmand %vm624_vm2, %vm625_vm9 }
 0x217   :  { %v315_v17 = vpop.f32.mrf.mxu0 }
 0x218   :  { %v323_v47 = vsel %vm319_vm11, %v315_v17, 0.0  ;;  %vm827_vm11 = vcmp.ge.s32.totalorder %v1042_v39, 29 }
 0x219   :  { %v894_v18 = vpop.f32.mrf.mxu0  ;;  %v324_v25 = vadd.f32 %v323_v47, %v115_v22  ;;  %vm829_vm1 = vmand %vm827_vm11, %vm828_vm0 }
 0x21b   :  { %v416_v19 = vpop.f32.mrf.mxu1 }
 0x21c   :  { %v425_v24 = vsel %vm422_vm8, %v416_v19, 0.0 }
 0x21d   :  { %v899_v20 = vpop.f32.mrf.mxu1  ;;  %v426_v28 = vadd.f32 %v425_v24, %v324_v25 }
 0x21f   :  { %v518_v21 = vpop.f32.mrf.mxu0 }
 0x220   :  { %v527_v27 = vsel %vm524_vm10, %v518_v21, 0.0 }
 0x221   :  { %v904_v23 = vpop.f32.mrf.mxu0  ;;  %v528_v31 = vadd.f32 %v527_v27, %v426_v28 }
 0x223   :  { %v620_v26 = vpop.f32.mrf.mxu1 }
 0x224   :  { %v629_v30 = vsel %vm626_vm15, %v620_v26, 0.0 }
 0x225   :  { %v909_v29 = vpop.f32.mrf.mxu1  ;;  %v630_v34 = vadd.f32 %v629_v30, %v528_v31 }
 0x227   :  { %v722_v32 = vpop.f32.mrf.mxu0 }
 0x228   :  { %v731_v33 = vsel %vm728_vm14, %v722_v32, 0.0 }
 0x229   :  { %v914_v35 = vpop.f32.mrf.mxu0  ;;  %v732_v36 = vadd.f32 %v731_v33, %v630_v34 }
 0x22b   :  { %v823_v37 = vpop.f32.mrf.mxu1 }
 0x22c   :  { %v832_v38 = vsel %vm829_vm1, %v823_v37, 0.0 }
 0x22d   :  { %v833_v40 = vadd.f32 %v832_v38, %v732_v36  ;;  %v919_v41 = vpop.f32.mrf.mxu1 }
 0x22f   :  { %835 = vst.msk [vmem:[#allocation2] sm:$0x3] %vm45_vm3, %v833_v40 }
 0x236   :  { %v839_v39 = vld [vmem:[#allocation2] sm:$0x3] }
 0x237   :  { %v847_v43 = vadd.f32 %v877_v42, %v839_v39 }
 0x239   :  { %848 = vst.msk [vmem:[#allocation8] sm:$0x3] %vm45_vm3, %v847_v43 }
 0x23a   :  { %978 = shalt.err (!%p975_p0)
}
 0x23b   :  { %858 = dma.vmem_to_hbm [thread:$0]  %s856_s25, 32, %s1202_s3, [#allocation5]  }
 0x23c   :  { %991 = dma.done.wait [#allocation5], 32  }
 0x23d   :  { %992 = vsyncadd [#allocation5], 4294967264 }
 0x23e   :  { %862 = vsyncpa [#allocation4], 1 }
 0x23f   :  { %863 = vsyncpa [#allocation7], 1 }
 0x240   :  { %864 = vsyncpa [#allocation5], 1 }

</bundles_post_ra>
